<compile_context>
chip_gen: v7x
topology: tpu7x:2x2x1
jax: 0.10.0
libtpu: 0.0.40
codegen_flags: <defaults>
</compile_context>

<pallas_src>
import jax
import jax.numpy as jnp
from jax.experimental import pallas as pl
from jax.experimental.pallas import tpu as pltpu

_LANES = 128            # vreg lane width
_SUBLANES = 8           # f32 sublane tile
_DEFAULT_TILE_N = 4096  # batch rows per grid step (amortizes ~0.35us step cost)


def _round_up(x, m):
    return (x + m - 1) // m * m


def _mlp_kernel(x_ref, w1_ref, b1_ref, w2_ref, b2_ref, o_ref):
    """One batch tile: o = relu(x @ W1 + b1) @ W2 + b2 (f32 accumulate).

    W2/b2 are lane-padded (H, Opad)/(1, Opad) for clean vreg layout; the store
    slices back to the true n_output width so HBM only sees (tn, n_output).
    """
    x = x_ref[...]                                    # (TN, F) f32
    n_features = x_ref.shape[1]
    n_output = o_ref.shape[1]                         # true (unpadded) width

    if n_features <= 4:
        # Depth-F contraction with tiny F: F unrolled VPU broadcast MACs.
        h = x[:, 0:1] * w1_ref[0:1, :]                # (TN, 1) * (1, H)
        for f in range(1, n_features):                # static unroll
            h = h + x[:, f:f + 1] * w1_ref[f:f + 1, :]
    else:
        h = jnp.dot(x, w1_ref[...], preferred_element_type=jnp.float32)
    h = h + b1_ref[...]                               # (TN, H) + (1, H)
    h = jnp.maximum(h, 0.0)                           # torch.relu (f32 on VPU)

    o = jnp.dot(h, w2_ref[...], preferred_element_type=jnp.float32)
    o = o + b2_ref[...]                               # (TN, Opad) + (1, Opad)
    # In-register slice: store only the real output columns (no padded HBM write).
    o_ref[...] = o[:, :n_output].astype(o_ref.dtype)


def prepare_params(w_hidden, b_hidden, w_out, b_out):
    """One-time parameter prep (do at parameter-creation time, NOT per forward).

    Converts PyTorch Linear layout (out, in) to the kernel's (in, out) layout
    and zero-pads the *weights'* output dim up to a multiple of 128 lanes so
    the in-kernel vreg layout is dense.  The kernel's HBM output stays at the
    true n_output width.  Returns ((w1, b1, w2, b2), n_output).
    """
    n_hidden, _ = w_hidden.shape
    n_output = w_out.shape[0]
    o_pad = _round_up(n_output, _LANES)

    w1 = jnp.asarray(w_hidden, jnp.float32).T                      # (F, H)
    b1 = jnp.asarray(b_hidden, jnp.float32).reshape(1, n_hidden)   # (1, H)
    w2 = jnp.zeros((n_hidden, o_pad), jnp.float32)
    w2 = w2.at[:, :n_output].set(jnp.asarray(w_out, jnp.float32).T)    # (H, Opad)
    b2 = jnp.zeros((1, o_pad), jnp.float32)
    b2 = b2.at[:, :n_output].set(
        jnp.asarray(b_out, jnp.float32).reshape(1, n_output))          # (1, Opad)
    return (w1, b1, w2, b2), n_output


def net_forward_prepared(x, params, n_output, *, tile_n=_DEFAULT_TILE_N):
    """Forward pass with pre-transposed / pre-padded parameters."""
    w1, b1, w2, b2 = params
    x = jnp.asarray(x, jnp.float32)
    n, n_features = x.shape
    n_hidden = w1.shape[1]
    o_pad = w2.shape[1]

    # Batch tile: multiple of 8 sublanes, never larger than needed.
    tn = _round_up(min(tile_n, _round_up(n, _SUBLANES)), _SUBLANES)
    grid = (pl.cdiv(n, tn),)

    out = pl.pallas_call(
        _mlp_kernel,
        out_shape=jax.ShapeDtypeStruct((n, n_output), jnp.float32),
        grid_spec=pltpu.PrefetchScalarGridSpec(
            num_scalar_prefetch=0,
            grid=grid,
            in_specs=[
                pl.BlockSpec((tn, n_features), lambda i: (i, 0)),        # x tile
                pl.BlockSpec((n_features, n_hidden), lambda i: (0, 0)),  # W1 resident
                pl.BlockSpec((1, n_hidden), lambda i: (0, 0)),           # b1 resident
                pl.BlockSpec((n_hidden, o_pad), lambda i: (0, 0)),       # W2 resident
                pl.BlockSpec((1, o_pad), lambda i: (0, 0)),              # b2 resident
            ],
            # Last dim == full array dim (n_output), so the (8,128) rule holds.
            out_specs=pl.BlockSpec((tn, n_output), lambda i: (i, 0)),
        ),
        compiler_params=pltpu.CompilerParams(
            # Batch tiles are independent -> shard across TCs on v7x.
            dimension_semantics=("parallel",),
        ),
    )(x, w1, b1, w2, b2)
    return out


def net_forward(x, w_hidden, b_hidden, w_out, b_out, *, tile_n=_DEFAULT_TILE_N):
    """Convenience wrapper taking raw PyTorch-layout parameters.

    Prefer calling prepare_params() once and net_forward_prepared() per step so
    the transpose/padding does not run on every forward call.
    """
    params, n_output = prepare_params(w_hidden, b_hidden, w_out, b_out)
    return net_forward_prepared(x, params, n_output, tile_n=tile_n)


def _reference(x, w_hidden, b_hidden, w_out, b_out):
    h = jnp.maximum(x @ w_hidden.T + b_hidden, 0.0)
    return h @ w_out.T + b_out


if __name__ == "__main__":
    # Shapes implied by the tutorial: n_features=2, n_output=2, small hidden.
    n_features, n_hidden, n_output = 2, 32, 2
    n_per_class = 8                          # small batch: 2 * 8 = 16 samples

    key = jax.random.PRNGKey(0)
    k0, k1, kw1, kb1, kw2, kb2 = jax.random.split(key, 6)

    # Data like the tutorial: two Gaussian blobs at +2 and -2.
    x0 = 2.0 + jax.random.normal(k0, (n_per_class, n_features), jnp.float32)
    x1 = -2.0 + jax.random.normal(k1, (n_per_class, n_features), jnp.float32)
    x = jnp.concatenate([x0, x1], axis=0)    # (16, 2) float32

    # Deterministic parameter init (PyTorch Linear layout: (out, in)).
    def uniform_init(k, shape, fan_in):
        bound = 1.0 / jnp.sqrt(float(fan_in))
        return jax.random.uniform(k, shape, jnp.float32, -bound, bound)

    w_hidden = uniform_init(kw1, (n_hidden, n_features), n_features)
    b_hidden = uniform_init(kb1, (n_hidden,), n_features)
    w_out = uniform_init(kw2, (n_output, n_hidden), n_hidden)
    b_out = uniform_init(kb2, (n_output,), n_hidden)

    # One-time parameter prep (transpose + weight lane-padding), then the kernel.
    params, n_out = prepare_params(w_hidden, b_hidden, w_out, b_out)
    out = net_forward_prepared(x, params, n_out)
    out = jax.block_until_ready(out)

    ref = _reference(x, w_hidden, b_hidden, w_out, b_out)
    assert out.shape == (2 * n_per_class, n_output)
    assert jnp.allclose(out, ref, atol=1e-5, rtol=1e-5)

    print("KERNEL_OK")
</pallas_src>

<mosaic_0001>
module attributes {stable_mosaic.version = 11 : i64} {
  func.func @_mlp_kernel(%arg0: i32, %arg1: memref<16x2xf32, #tpu.memory_space<vmem>>, %arg2: memref<2x32xf32, #tpu.memory_space<vmem>>, %arg3: memref<1x32xf32, #tpu.memory_space<vmem>>, %arg4: memref<32x128xf32, #tpu.memory_space<vmem>>, %arg5: memref<1x128xf32, #tpu.memory_space<vmem>>, %arg6: memref<16x2xf32, #tpu.memory_space<vmem>>) attributes {dimension_semantics = [#tpu.dimension_semantics<parallel>], iteration_bounds = array<i64: 1>, scalar_prefetch = 0 : i64, scratch_operands = 0 : i64, tpu.core_type = #tpu.core_type<tc>, window_params = [{transform_indices = @transform_0, window_bounds = array<i64: 16, 2>}, {pipeline_mode = #tpu.pipeline_mode<synchronous>, transform_indices = @transform_1, window_bounds = array<i64: 2, 32>}, {pipeline_mode = #tpu.pipeline_mode<synchronous>, transform_indices = @transform_2, window_bounds = array<i64: 1, 32>}, {pipeline_mode = #tpu.pipeline_mode<synchronous>, transform_indices = @transform_3, window_bounds = array<i64: 32, 128>}, {pipeline_mode = #tpu.pipeline_mode<synchronous>, transform_indices = @transform_4, window_bounds = array<i64: 1, 128>}, {transform_indices = @transform_5, window_bounds = array<i64: 16, 2>}]} {
    %c0 = arith.constant 0 : index
    %c0_0 = arith.constant 0 : index
    %0 = vector.load %arg1[%c0, %c0_0] : memref<16x2xf32, #tpu.memory_space<vmem>>, vector<16x2xf32>
    %1 = vector.extract_strided_slice %0 {offsets = [0, 0], sizes = [16, 1], strides = [1, 1]} : vector<16x2xf32> to vector<16x1xf32>
    %c0_1 = arith.constant 0 : index
    %c0_2 = arith.constant 0 : index
    %2 = vector.load %arg2[%c0_1, %c0_2] : memref<2x32xf32, #tpu.memory_space<vmem>>, vector<1x32xf32>
    %3 = vector.broadcast %1 : vector<16x1xf32> to vector<16x32xf32>
    %4 = vector.broadcast %2 : vector<1x32xf32> to vector<16x32xf32>
    %5 = arith.mulf %3, %4 : vector<16x32xf32>
    %6 = vector.extract_strided_slice %0 {offsets = [0, 1], sizes = [16, 1], strides = [1, 1]} : vector<16x2xf32> to vector<16x1xf32>
    %c1 = arith.constant 1 : index
    %c0_3 = arith.constant 0 : index
    %7 = vector.load %arg2[%c1, %c0_3] : memref<2x32xf32, #tpu.memory_space<vmem>>, vector<1x32xf32>
    %8 = vector.broadcast %6 : vector<16x1xf32> to vector<16x32xf32>
    %9 = vector.broadcast %7 : vector<1x32xf32> to vector<16x32xf32>
    %10 = arith.mulf %8, %9 : vector<16x32xf32>
    %11 = arith.addf %5, %10 : vector<16x32xf32>
    %c0_4 = arith.constant 0 : index
    %c0_5 = arith.constant 0 : index
    %12 = vector.load %arg3[%c0_4, %c0_5] : memref<1x32xf32, #tpu.memory_space<vmem>>, vector<1x32xf32>
    %13 = vector.broadcast %12 : vector<1x32xf32> to vector<16x32xf32>
    %14 = arith.addf %11, %13 : vector<16x32xf32>
    %cst = arith.constant 0.000000e+00 : f32
    %15 = vector.broadcast %cst : f32 to vector<16x32xf32>
    %16 = arith.maximumf %14, %15 : vector<16x32xf32>
    %c0_6 = arith.constant 0 : index
    %c0_7 = arith.constant 0 : index
    %17 = vector.load %arg4[%c0_6, %c0_7] : memref<32x128xf32, #tpu.memory_space<vmem>>, vector<32x128xf32>
    %cst_8 = arith.constant dense<0.000000e+00> : vector<16x128xf32>
    %18 = tpu.matmul %16, %17, %cst_8 {dimension_numbers = #tpu.dot_dimension_numbers<[1], [0], [0], [1], [0, 0, 1, 1], [], []>} : vector<16x32xf32>, vector<32x128xf32>, vector<16x128xf32> -> vector<16x128xf32>
    %c0_9 = arith.constant 0 : index
    %c0_10 = arith.constant 0 : index
    %19 = vector.load %arg5[%c0_9, %c0_10] : memref<1x128xf32, #tpu.memory_space<vmem>>, vector<1x128xf32>
    %20 = vector.broadcast %19 : vector<1x128xf32> to vector<16x128xf32>
    %21 = arith.addf %18, %20 : vector<16x128xf32>
    %22 = vector.extract_strided_slice %21 {offsets = [0, 0], sizes = [16, 2], strides = [1, 1]} : vector<16x128xf32> to vector<16x2xf32>
    %c0_11 = arith.constant 0 : index
    %c0_12 = arith.constant 0 : index
    %23 = vector.load %arg6[%c0_11, %c0_12] : memref<16x2xf32, #tpu.memory_space<vmem>>, vector<16x2xf32>
    tpu.vector_store %arg6[%c0_11, %c0_12], %22 {strides = array<i32>} : memref<16x2xf32, #tpu.memory_space<vmem>>, vector<16x2xf32>,
    return
  }
  func.func @transform_0(%arg0: i32) -> (i32, i32) {
    %c0_i32 = arith.constant 0 : i32
    %c0_i32_0 = arith.constant 0 : i32
    return %arg0, %c0_i32 : i32, i32
  }
  func.func @transform_1(%arg0: i32) -> (i32, i32) {
    %c0_i32 = arith.constant 0 : i32
    %c0_i32_0 = arith.constant 0 : i32
    %c0_i32_1 = arith.constant 0 : i32
    return %c0_i32, %c0_i32_0 : i32, i32
  }
  func.func @transform_2(%arg0: i32) -> (i32, i32) {
    %c0_i32 = arith.constant 0 : i32
    %c0_i32_0 = arith.constant 0 : i32
    %c0_i32_1 = arith.constant 0 : i32
    return %c0_i32, %c0_i32_0 : i32, i32
  }
  func.func @transform_3(%arg0: i32) -> (i32, i32) {
    %c0_i32 = arith.constant 0 : i32
    %c0_i32_0 = arith.constant 0 : i32
    %c0_i32_1 = arith.constant 0 : i32
    return %c0_i32, %c0_i32_0 : i32, i32
  }
  func.func @transform_4(%arg0: i32) -> (i32, i32) {
    %c0_i32 = arith.constant 0 : i32
    %c0_i32_0 = arith.constant 0 : i32
    %c0_i32_1 = arith.constant 0 : i32
    return %c0_i32, %c0_i32_0 : i32, i32
  }
  func.func @transform_5(%arg0: i32) -> (i32, i32) {
    %c0_i32 = arith.constant 0 : i32
    %c0_i32_0 = arith.constant 0 : i32
    return %arg0, %c0_i32 : i32, i32
  }
}

</mosaic_0001>

<bundles_post_ra>
// kernel: tpu_custom_call.1
= control target key start
LH: loop header
LB: loop body
LE: loop exit
PB: predicated region body
PF: predicated region fallthrough
CT: control target
= control target key end

     0   :  { %10 = vsyncpa [#allocation3], 0  ;;  %s246_s18 = smov [#allocation2]   ;;  %s317_s0 = inlined_call_operand.vmem [shape: f32[16,2], index: 0, kind: input, shape index: {}]   ;;  %s318_s1 = inlined_call_operand.vmem [shape: f32[2,32], index: 1, kind: input, shape index: {}]   ;;  %s319_s2 = inlined_call_operand.vmem [shape: f32[1,32], index: 2, kind: input, shape index: {}]   ;;  %s320_s3 = inlined_call_operand.hbm [shape: f32[32,128], index: 3, kind: input, shape index: {}]   ;;  %s321_s4 = inlined_call_operand.vmem [shape: f32[1,128], index: 4, kind: input, shape index: {}]   ;;  %s322_s5 = inlined_call_operand.vmem [shape: f32[16,2], index: 5, kind: output, shape index: {}]  }
   0x1   :  { %s22_s19 = sshll.u32 %s246_s18, 4  ;;  %s222_s22 = scalar_lea.hbm %s320_s3, 512  ;;  %s23_s19 = int_to_ptr.vmem [resolvable:$true] %s22_s19 }
   0x2   :  { %p223_p0 = scmp.ne.s32.totalorder %s320_s3, %s222_s22  ;;  %p226_p1 = scmp.lt.u32.totalorder %s222_s22, %s320_s3 }
   0x4   :  { %p228_p2 = pnand %p226_p1, %p223_p0 }
   0x6   :  { %231 = shalt.err (!%p228_p2)
}
   0x7   :  { %s232_s27 = scalar_lea.vmem %s23_s19, 512  ;;  %p237_p4 = scmp.lt.s32.totalorder %s23_s19, %s23_s19 }
   0x8   :  { %p233_p3 = scmp.ne.s32.totalorder %s23_s19, %s232_s27  ;;  %p238_p5 = scmp.lt.s32.totalorder %s232_s27, %s232_s27 }
   0xa   :  { %p239_p6 = por %p238_p5, %p237_p4 }
   0xc   :  { %p240_p7 = pnand %p239_p6, %p233_p3 }
   0xe   :  { %243 = shalt.err (!%p240_p7)
}
   0xf   :  { %s247_s28 = smov 128   ;;  %s248_s29 = smov 8  }
  0x10   :  { %28 = dma.hbm_to_vmem [thread:$0]  %s320_s3, 512, %s23_s19, [#allocation3], %s247_s28, %s247_s28, %s248_s29  }
  0x11   :  { %244 = dma.done.wait [#allocation3], 512  }
  0x12   :  { %245 = vsyncadd [#allocation3], 4294966784  ;;  %v249_v0 = vmov 0   ;;  %v35_v1 = vld [vmem:[%s317_s0 + $0x8] sm:$0xff]  ;;  %v34_v2 = vld [vmem:[%s317_s0] sm:$0xff]  ;;  %v250_v5 = vmov 1  }
  0x13   :  { %220 = vset.pattern.permute.xlu1 %v249_v0  ;;  %218 = vset.pattern.permute.xlu0 %v249_v0  ;;  %v81_v3 = vld [vmem:[#allocation2] sm:$0xff]  ;;  %v82_v4 = vld [vmem:[#allocation2 + $0x8] sm:$0xff]  ;;  %v83_v7 = vld [vmem:[#allocation2 + $0x10] sm:$0xff]  ;;  %vm92_vm0 = vcmask 261120   ;;  %vm174_vm1 = vcmask 15360  }
  0x14   :  { %44 = vperm.xlu1 %220, %v35_v1   ;;  %39 = vperm.xlu0 %218, %v34_v2   ;;  %v205_v6 = vpack.c.bf16 %v82_v4, %v81_v3  ;;  %v84_v8 = vld [vmem:[#allocation2 + $0x18] sm:$0xff]  ;;  %v182_v12 = vld [vmem:[%s318_s1] ss:$0 sm:$0xff]  ;;  %v183_v13 = vld [vmem:[%s318_s1 + $0x1] ss:$0 sm:$0xff] }
  0x15   :  { %v209_v9 = vpack.c.bf16 %v84_v8, %v83_v7  ;;  %v184_v20 = vld [vmem:[%s319_s2] ss:$0 sm:$0xff] }
  0x16   :  { %206 = vmatprep.subr.bf16.mxu0 %v205_v6  ;;  %v185_v27 = vld [vmem:[%s321_s4] ss:$0 sm:$0xff] }
  0x17   :  { %208 = vmatpush3.bf16.msra.mxu0 %v205_v6 }
  0x18   :  { %221 = vset.pattern.permute.xlu1 %v250_v5  ;;  %219 = vset.pattern.permute.xlu0 %v250_v5 }
  0x19   :  { %59 = vperm.xlu1 %221, %v35_v1   ;;  %55 = vperm.xlu0 %219, %v34_v2  }
  0x1a   :  { %210 = vmatprep.subr.bf16.mxu0 %v209_v9 }
  0x1b   :  { %212 = vmatpush3.bf16.msra.mxu0 %v209_v9 }
  0x93   :  { %v40_v10 = vpop.permute.xlu0 %39  ;;  %v45_v11 = vpop.permute.xlu1 %44 }
  0x94   :  { %v51_v16 = vmul.f32 %v182_v12, %v40_v10  ;;  %v52_v17 = vmul.f32 %v182_v12, %v45_v11 }
  0x98   :  { %v60_v14 = vpop.permute.xlu1 %59  ;;  %v56_v15 = vpop.permute.xlu0 %55 }
  0x99   :  { %v67_v18 = vmul.f32 %v183_v13, %v60_v14  ;;  %v66_v19 = vmul.f32 %v183_v13, %v56_v15 }
  0x9b   :  { %v69_v21 = vadd.f32 %v67_v18, %v52_v17  ;;  %v68_v22 = vadd.f32 %v66_v19, %v51_v16 }
  0x9d   :  { %v77_v23 = vadd.f32 %v184_v20, %v68_v22  ;;  %v78_v24 = vadd.f32 %v184_v20, %v69_v21 }
  0x9f   :  { %v79_v25 = vmax.f32 %v77_v23, 0.0  ;;  %v80_v26 = vmax.f32 %v78_v24, 0.0 }
  0xa1   :  { %202 = vmatprep.mubr.msk.f32.mxu0 %vm92_vm0, %v79_v25 }
  0xa2   :  { %203 = vmatmul.mubr.msk.f32.vlgmr.msra.gmra.mrb[0].mxu0 %vm92_vm0, %v80_v26 }
 0x175   :  { %v204_v28 = vpop.f32.mrb[0].mxu0 }
 0x176   :  { %v171_v29 = vadd.f32 %v204_v28, %v185_v27  ;;  %v165_v30 = vpop.f32.mrb[1].mxu0 }
 0x177   :  { %v166_v31 = vadd.f32 %v185_v27, %v165_v30 }
 0x178   :  { %176 = vst.msk [vmem:[%s322_s5 + $0x8] sm:$0xff] %vm174_vm1, %v171_v29 }
 0x179   :  { %175 = vst.msk [vmem:[%s322_s5] sm:$0xff] %vm174_vm1, %v166_v31 }
 0x17a   :  { %181 = vsyncpa [#allocation3], 1 }

</bundles_post_ra>
